<compile_context>
chip_gen: v7x
topology: tpu7x:2x2x1
jax: 0.10.0
libtpu: 0.0.40
codegen_flags: <defaults>
</compile_context>

<pallas_src>
import jax
import jax.numpy as jnp
from jax.experimental import pallas as pl
from jax.experimental.pallas import tpu as pltpu


def _mlp_classifier_kernel(x_ref, w1_ref, b1_ref, w2_ref, b2_ref,
                           w3d_ref, b3d_ref, out_ref):
    # fc1 -> tanh  (bf16 matmul operands, f32 accumulation / activations)
    h1 = jnp.tanh(
        jnp.dot(x_ref[...].astype(jnp.bfloat16), w1_ref[...],
                preferred_element_type=jnp.float32) + b1_ref[...])
    # fc2 -> tanh
    h2 = jnp.tanh(
        jnp.dot(h1.astype(jnp.bfloat16), w2_ref[...],
                preferred_element_type=jnp.float32) + b2_ref[...])
    # fc3 against duplicated weights: logits2[:, :C] == logits2[:, C:]
    logits2 = (jnp.dot(h2.astype(jnp.bfloat16), w3d_ref[...],
                       preferred_element_type=jnp.float32) + b3d_ref[...])

    # class_output = sigmoid(fc3(fc2_out))   (EUP path via jax.nn.sigmoid)
    cls2 = jax.nn.sigmoid(logits2)

    # output = softmax(fc3(fc2_out), dim=1).  Both halves of logits2 are
    # identical, so: row max over 2C lanes == row max over one head, and
    # sum(exp) over 2C lanes == 2 * sum(exp) over one head.
    m = jnp.max(logits2, axis=1, keepdims=True)
    e = jnp.exp(logits2 - m)
    denom = 0.5 * jnp.sum(e, axis=1, keepdims=True)
    sm2 = e * pl.reciprocal(denom, approx=False)  # exact, keeps tight tolerance

    # Single lane-dense store: sigmoid head in lanes [0, C), softmax in [C, 2C).
    c = out_ref.shape[-1] // 2
    lane = jax.lax.broadcasted_iota(jnp.int32, logits2.shape, 1)
    out_ref[...] = jnp.where(lane < c, cls2, sm2)


def nn_classifier_forward(x, params, tile_b=256):
    """Pallas forward pass of NN_classifier.

    x: [B, inp] float32
    params: dict with w1 [inp,h1], b1 [1,h1], w2 [h1,h2], b2 [1,h2],
            w3 [h2,C], b3 [1,C]
    Returns (class_output, output), each [B, C] float32.
    """
    B, inp = x.shape
    C = params["w3"].shape[1]

    # Batch tile: multiple of 8 sublanes, clamped for small batches.  The
    # default (256 rows) keeps (x tile + out tile) * 2 pipeline buffers plus
    # the resident weights far under v7x's 64 MiB VMEM.
    tile_b = int(min(tile_b, max(8, ((B + 7) // 8) * 8)))
    n_tiles = pl.cdiv(B, tile_b)
    b_pad = n_tiles * tile_b
    if b_pad != B:
        x = jnp.pad(x, ((0, b_pad - B), (0, 0)))

    # bf16 weights for native MXU rate; biases stay f32.  fc3 weight/bias are
    # duplicated along the output dim so the kernel emits one wide output tile.
    w1 = params["w1"].astype(jnp.bfloat16)
    w2 = params["w2"].astype(jnp.bfloat16)
    w3d = jnp.concatenate([params["w3"], params["w3"]], axis=1).astype(jnp.bfloat16)
    b1 = params["b1"]
    b2 = params["b2"]
    b3d = jnp.concatenate([params["b3"], params["b3"]], axis=1)

    resident = lambda arr: pl.BlockSpec(arr.shape, lambda i: (0, 0))

    out = pl.pallas_call(
        _mlp_classifier_kernel,
        out_shape=jax.ShapeDtypeStruct((b_pad, 2 * C), jnp.float32),
        grid=(n_tiles,),
        in_specs=[
            pl.BlockSpec((tile_b, inp), lambda i: (i, 0)),
            resident(w1), resident(b1),
            resident(w2), resident(b2),
            resident(w3d), resident(b3d),
        ],
        out_specs=pl.BlockSpec((tile_b, 2 * C), lambda i: (i, 0)),
        compiler_params=pltpu.CompilerParams(
            dimension_semantics=("parallel",)),
    )(x, w1, b1, w2, b2, w3d, b3d)

    out = out[:B]
    return out[:, :C], out[:, C:]


def init_params(key, inp, h1, h2, class_num):
    """Deterministic PyTorch-style init: U(-1/sqrt(fan_in), 1/sqrt(fan_in))."""
    ks = jax.random.split(key, 6)

    def lin(kw, kb, fan_in, fan_out):
        bound = 1.0 / jnp.sqrt(fan_in)
        w = jax.random.uniform(kw, (fan_in, fan_out), jnp.float32, -bound, bound)
        b = jax.random.uniform(kb, (1, fan_out), jnp.float32, -bound, bound)
        return w, b

    w1, b1 = lin(ks[0], ks[1], inp, h1)
    w2, b2 = lin(ks[2], ks[3], h1, h2)
    w3, b3 = lin(ks[4], ks[5], h2, class_num)
    return dict(w1=w1, b1=b1, w2=w2, b2=b2, w3=w3, b3=b3)


def reference_forward_bf16(x, p):
    """Matches the kernel's compute recipe (bf16 matmul inputs, f32 accum)."""
    dot = lambda a, w: jnp.dot(a.astype(jnp.bfloat16), w.astype(jnp.bfloat16),
                               preferred_element_type=jnp.float32)
    h1 = jnp.tanh(dot(x, p["w1"]) + p["b1"])
    h2 = jnp.tanh(dot(h1, p["w2"]) + p["b2"])
    logits = dot(h2, p["w3"]) + p["b3"]
    return jax.nn.sigmoid(logits), jax.nn.softmax(logits, axis=1)


def reference_forward_f32(x, p):
    """Full-precision reference of the PyTorch module semantics."""
    h1 = jnp.tanh(x @ p["w1"] + p["b1"])
    h2 = jnp.tanh(h1 @ p["w2"] + p["b2"])
    logits = h2 @ p["w3"] + p["b3"]
    return jax.nn.sigmoid(logits), jax.nn.softmax(logits, axis=1)


if __name__ == "__main__":
    key = jax.random.PRNGKey(0)
    k_x, k_p, k_x2 = jax.random.split(key, 3)

    B, INP, H1, H2, CLASSES = 8, 32, 64, 32, 8
    x = jax.random.normal(k_x, (B, INP), jnp.float32)
    params = init_params(k_p, INP, H1, H2, CLASSES)

    class_output, output = nn_classifier_forward(x, params)
    jax.block_until_ready((class_output, output))

    # Tight check against a reference using the same bf16-matmul recipe.
    ref_cls, ref_sm = reference_forward_bf16(x, params)
    assert jnp.allclose(class_output, ref_cls, atol=1e-4, rtol=1e-4)
    assert jnp.allclose(output, ref_sm, atol=1e-4, rtol=1e-4)

    # Loose check against the full-f32 module semantics (bf16 rounding only).
    f32_cls, f32_sm = reference_forward_f32(x, params)
    assert jnp.allclose(class_output, f32_cls, atol=3e-2)
    assert jnp.allclose(output, f32_sm, atol=3e-2)

    # Exercise the multi-tile grid + batch-padding path.
    B2 = 20
    x2 = jax.random.normal(k_x2, (B2, INP), jnp.float32)
    cls2, sm2 = nn_classifier_forward(x2, params, tile_b=8)
    jax.block_until_ready((cls2, sm2))
    r_cls2, r_sm2 = reference_forward_bf16(x2, params)
    assert jnp.allclose(cls2, r_cls2, atol=1e-4, rtol=1e-4)
    assert jnp.allclose(sm2, r_sm2, atol=1e-4, rtol=1e-4)

    print("KERNEL_OK")
</pallas_src>

<mosaic_0001>
module attributes {stable_mosaic.version = 11 : i64} {
  func.func @_mlp_classifier_kernel(%arg0: i32, %arg1: memref<8x32xf32, #tpu.memory_space<vmem>>, %arg2: memref<32x64xbf16, #tpu.memory_space<vmem>>, %arg3: memref<1x64xf32, #tpu.memory_space<vmem>>, %arg4: memref<64x32xbf16, #tpu.memory_space<vmem>>, %arg5: memref<1x32xf32, #tpu.memory_space<vmem>>, %arg6: memref<32x16xbf16, #tpu.memory_space<vmem>>, %arg7: memref<1x16xf32, #tpu.memory_space<vmem>>, %arg8: memref<8x16xf32, #tpu.memory_space<vmem>>) attributes {dimension_semantics = [#tpu.dimension_semantics<parallel>], iteration_bounds = array<i64: 1>, scalar_prefetch = 0 : i64, scratch_operands = 0 : i64, tpu.core_type = #tpu.core_type<tc>, window_params = [{transform_indices = @transform_0, window_bounds = array<i64: 8, 32>}, {pipeline_mode = #tpu.pipeline_mode<synchronous>, transform_indices = @transform_1, window_bounds = array<i64: 32, 64>}, {pipeline_mode = #tpu.pipeline_mode<synchronous>, transform_indices = @transform_2, window_bounds = array<i64: 1, 64>}, {pipeline_mode = #tpu.pipeline_mode<synchronous>, transform_indices = @transform_3, window_bounds = array<i64: 64, 32>}, {pipeline_mode = #tpu.pipeline_mode<synchronous>, transform_indices = @transform_4, window_bounds = array<i64: 1, 32>}, {pipeline_mode = #tpu.pipeline_mode<synchronous>, transform_indices = @transform_5, window_bounds = array<i64: 32, 16>}, {pipeline_mode = #tpu.pipeline_mode<synchronous>, transform_indices = @transform_6, window_bounds = array<i64: 1, 16>}, {transform_indices = @transform_7, window_bounds = array<i64: 8, 16>}]} {
    %c0 = arith.constant 0 : index
    %c0_0 = arith.constant 0 : index
    %0 = vector.load %arg1[%c0, %c0_0] : memref<8x32xf32, #tpu.memory_space<vmem>>, vector<8x32xf32>
    %1 = arith.truncf %0 : vector<8x32xf32> to vector<8x32xbf16>
    %c0_1 = arith.constant 0 : index
    %c0_2 = arith.constant 0 : index
    %2 = vector.load %arg2[%c0_1, %c0_2] : memref<32x64xbf16, #tpu.memory_space<vmem>>, vector<32x64xbf16>
    %cst = arith.constant dense<0.000000e+00> : vector<8x64xf32>
    %3 = tpu.matmul %1, %2, %cst {dimension_numbers = #tpu.dot_dimension_numbers<[1], [0], [0], [1], [0, 0, 1, 1], [], []>} : vector<8x32xbf16>, vector<32x64xbf16>, vector<8x64xf32> -> vector<8x64xf32>
    %c0_3 = arith.constant 0 : index
    %c0_4 = arith.constant 0 : index
    %4 = vector.load %arg3[%c0_3, %c0_4] : memref<1x64xf32, #tpu.memory_space<vmem>>, vector<1x64xf32>
    %5 = vector.broadcast %4 : vector<1x64xf32> to vector<8x64xf32>
    %6 = arith.addf %3, %5 : vector<8x64xf32>
    %7 = math.tanh %6 : vector<8x64xf32>
    %8 = arith.truncf %7 : vector<8x64xf32> to vector<8x64xbf16>
    %c0_5 = arith.constant 0 : index
    %c0_6 = arith.constant 0 : index
    %9 = vector.load %arg4[%c0_5, %c0_6] : memref<64x32xbf16, #tpu.memory_space<vmem>>, vector<64x32xbf16>
    %cst_7 = arith.constant dense<0.000000e+00> : vector<8x32xf32>
    %10 = tpu.matmul %8, %9, %cst_7 {dimension_numbers = #tpu.dot_dimension_numbers<[1], [0], [0], [1], [0, 0, 1, 1], [], []>} : vector<8x64xbf16>, vector<64x32xbf16>, vector<8x32xf32> -> vector<8x32xf32>
    %c0_8 = arith.constant 0 : index
    %c0_9 = arith.constant 0 : index
    %11 = vector.load %arg5[%c0_8, %c0_9] : memref<1x32xf32, #tpu.memory_space<vmem>>, vector<1x32xf32>
    %12 = vector.broadcast %11 : vector<1x32xf32> to vector<8x32xf32>
    %13 = arith.addf %10, %12 : vector<8x32xf32>
    %14 = math.tanh %13 : vector<8x32xf32>
    %15 = arith.truncf %14 : vector<8x32xf32> to vector<8x32xbf16>
    %c0_10 = arith.constant 0 : index
    %c0_11 = arith.constant 0 : index
    %16 = vector.load %arg6[%c0_10, %c0_11] : memref<32x16xbf16, #tpu.memory_space<vmem>>, vector<32x16xbf16>
    %cst_12 = arith.constant dense<0.000000e+00> : vector<8x16xf32>
    %17 = tpu.matmul %15, %16, %cst_12 {dimension_numbers = #tpu.dot_dimension_numbers<[1], [0], [0], [1], [0, 0, 1, 1], [], []>} : vector<8x32xbf16>, vector<32x16xbf16>, vector<8x16xf32> -> vector<8x16xf32>
    %c0_13 = arith.constant 0 : index
    %c0_14 = arith.constant 0 : index
    %18 = vector.load %arg7[%c0_13, %c0_14] : memref<1x16xf32, #tpu.memory_space<vmem>>, vector<1x16xf32>
    %19 = vector.broadcast %18 : vector<1x16xf32> to vector<8x16xf32>
    %20 = arith.addf %17, %19 : vector<8x16xf32>
    %21 = arith.negf %20 : vector<8x16xf32>
    %22 = math.exp %21 : vector<8x16xf32>
    %cst_15 = arith.constant 1.000000e+00 : f32
    %23 = vector.broadcast %cst_15 : f32 to vector<8x16xf32>
    %24 = arith.addf %23, %22 : vector<8x16xf32>
    %25 = arith.divf %23, %24 : vector<8x16xf32>
    %cst_16 = arith.constant dense<0xFF800000> : vector<8xf32>
    %26 = vector.multi_reduction <maximumf>, %20, %cst_16 [1] : vector<8x16xf32> to vector<8xf32>
    %27 = vector.shape_cast %26 : vector<8xf32> to vector<8x1xf32>
    %28 = vector.broadcast %27 : vector<8x1xf32> to vector<8x16xf32>
    %29 = arith.subf %20, %28 : vector<8x16xf32>
    %30 = math.exp %29 : vector<8x16xf32>
    %cst_17 = arith.constant dense<0.000000e+00> : vector<8xf32>
    %31 = vector.multi_reduction <add>, %30, %cst_17 [1] : vector<8x16xf32> to vector<8xf32>
    %32 = vector.shape_cast %31 : vector<8xf32> to vector<8x1xf32>
    %cst_18 = arith.constant 5.000000e-01 : f32
    %33 = vector.broadcast %cst_18 : f32 to vector<8x1xf32>
    %34 = arith.mulf %33, %32 : vector<8x1xf32>
    %35 = tpu.reciprocal %34 : vector<8x1xf32> -> vector<8x1xf32>
    %36 = vector.broadcast %35 : vector<8x1xf32> to vector<8x16xf32>
    %37 = arith.mulf %30, %36 : vector<8x16xf32>
    %38 = tpu.iota {dimensions = array<i32: 1>} : vector<8x16xi32>
    %c8_i32 = arith.constant 8 : i32
    %39 = vector.broadcast %c8_i32 : i32 to vector<8x16xi32>
    %40 = arith.cmpi slt, %38, %39 : vector<8x16xi32>
    %41 = arith.select %40, %25, %37 : vector<8x16xi1>, vector<8x16xf32>
    %c0_19 = arith.constant 0 : index
    %c0_20 = arith.constant 0 : index
    %42 = vector.load %arg8[%c0_19, %c0_20] : memref<8x16xf32, #tpu.memory_space<vmem>>, vector<8x16xf32>
    tpu.vector_store %arg8[%c0_19, %c0_20], %41 {strides = array<i32>} : memref<8x16xf32, #tpu.memory_space<vmem>>, vector<8x16xf32>,
    return
  }
  func.func @transform_0(%arg0: i32) -> (i32, i32) {
    %c0_i32 = arith.constant 0 : i32
    %c0_i32_0 = arith.constant 0 : i32
    return %arg0, %c0_i32 : i32, i32
  }
  func.func @transform_1(%arg0: i32) -> (i32, i32) {
    %c0_i32 = arith.constant 0 : i32
    %c0_i32_0 = arith.constant 0 : i32
    %c0_i32_1 = arith.constant 0 : i32
    return %c0_i32, %c0_i32_0 : i32, i32
  }
  func.func @transform_2(%arg0: i32) -> (i32, i32) {
    %c0_i32 = arith.constant 0 : i32
    %c0_i32_0 = arith.constant 0 : i32
    %c0_i32_1 = arith.constant 0 : i32
    return %c0_i32, %c0_i32_0 : i32, i32
  }
  func.func @transform_3(%arg0: i32) -> (i32, i32) {
    %c0_i32 = arith.constant 0 : i32
    %c0_i32_0 = arith.constant 0 : i32
    %c0_i32_1 = arith.constant 0 : i32
    return %c0_i32, %c0_i32_0 : i32, i32
  }
  func.func @transform_4(%arg0: i32) -> (i32, i32) {
    %c0_i32 = arith.constant 0 : i32
    %c0_i32_0 = arith.constant 0 : i32
    %c0_i32_1 = arith.constant 0 : i32
    return %c0_i32, %c0_i32_0 : i32, i32
  }
  func.func @transform_5(%arg0: i32) -> (i32, i32) {
    %c0_i32 = arith.constant 0 : i32
    %c0_i32_0 = arith.constant 0 : i32
    %c0_i32_1 = arith.constant 0 : i32
    return %c0_i32, %c0_i32_0 : i32, i32
  }
  func.func @transform_6(%arg0: i32) -> (i32, i32) {
    %c0_i32 = arith.constant 0 : i32
    %c0_i32_0 = arith.constant 0 : i32
    %c0_i32_1 = arith.constant 0 : i32
    return %c0_i32, %c0_i32_0 : i32, i32
  }
  func.func @transform_7(%arg0: i32) -> (i32, i32) {
    %c0_i32 = arith.constant 0 : i32
    %c0_i32_0 = arith.constant 0 : i32
    return %arg0, %c0_i32 : i32, i32
  }
}

</mosaic_0001>

<bundles_post_ra>
// kernel: tpu_custom_call.1
= control target key start
LH: loop header
LB: loop body
LE: loop exit
PB: predicated region body
PF: predicated region fallthrough
CT: control target
= control target key end

     0   :  { %v389_v1 = vmov 0.0   ;;  %vm390_vm0 = vmmov 0   ;;  %vm53_vm1 = vcmask 261120   ;;  %s485_s0 = inlined_call_operand.vmem [shape: f32[8,32], index: 0, kind: input, shape index: {}]   ;;  %s486_s1 = inlined_call_operand.vmem [shape: bf16[32,64], index: 1, kind: input, shape index: {}]   ;;  %s487_s2 = inlined_call_operand.vmem [shape: f32[1,64], index: 2, kind: input, shape index: {}]   ;;  %s488_s3 = inlined_call_operand.vmem [shape: bf16[64,32], index: 3, kind: input, shape index: {}]   ;;  %s489_s4 = inlined_call_operand.vmem [shape: f32[1,32], index: 4, kind: input, shape index: {}]   ;;  %s490_s5 = inlined_call_operand.vmem [shape: bf16[32,16], index: 5, kind: input, shape index: {}]   ;;  %s491_s6 = inlined_call_operand.vmem [shape: f32[1,16], index: 6, kind: input, shape index: {}]   ;;  %s492_s7 = inlined_call_operand.hbm [shape: f32[8,16], index: 7, kind: output, shape index: {}]  }
   0x1   :  { %v345_v0 = vld [vmem:[%s486_s1] sm:$0xff]   ;;  %314 = vmatprep.subr.bf16.mxu0 %v389_v1  ;;  %322 = vmatprep.subr.bf16.mxu1 %v389_v1  ;;  %v346_v2 = vld [vmem:[%s486_s1 + $0x8] sm:$0xff]  }
   0x2   :  { %315 = vmatpush3.bf16.msra.mxu0 %v345_v0  ;;  %318 = vmatprep.mubr.msk.bf16.mxu0 %vm390_vm0, %v389_v1  ;;  %v28_v3 = vld [vmem:[%s485_s0] sm:$0xff] }
   0x3   :  { %316 = vmatprep.subr.bf16.mxu0 %v389_v1  ;;  %330 = vmatprep.mubr.msk.bf16.mxu1 %vm390_vm0, %v389_v1  ;;  %v29_v4 = vpack.c.bf16 %v28_v3, %v28_v3 }
   0x6   :  { %317 = vmatpush3.bf16.msra.mxu0 %v346_v2 }
   0x7   :  { %12 = vsyncpa [#allocation3], 0  ;;  %334 = vmatprep.subr.bf16.mxu0 %v389_v1  ;;  %v347_v5 = vld [vmem:[%s488_s3] sm:$0xff]   ;;  %v348_v6 = vld [vmem:[%s488_s3 + $0x8] sm:$0xff]   ;;  %vm138_vm2 = vcmask 523264   ;;  %vm256_vm3 = vcmask 130048   ;;  %v269_v44 = vlaneseq }
   0x8   :  { %323 = vmatpush3.bf16.msra.mxu1 %v347_v5  ;;  %v349_v7 = vld [vmem:[%s488_s3 + $0x10] sm:$0xff]   ;;  %v350_v8 = vld [vmem:[%s488_s3 + $0x18] sm:$0xff]   ;;  %v288_v9 = vld [vmem:[%s487_s2] ss:$0 sm:$0xff] }
   0x9   :  { %319 = vmatmul.mubr.msk.bf16.vlgmr.msra.gmra.mrb[0].mxu0 %vm53_vm1, %v29_v4  ;;  %324 = vmatprep.subr.bf16.mxu1 %v389_v1  ;;  %v351_v17 = vld [vmem:[%s490_s5] sm:$0xff]   ;;  %v352_v18 = vld [vmem:[%s490_s5 + $0x8] sm:$0xff]   ;;  %v270_v45 = vand.u32 127, %v269_v44 }
   0xa   :  { %338 = vmatprep.mubr.msk.bf16.mxu0 %vm390_vm0, %v389_v1  ;;  %335 = vmatpush3.bf16.msra.mxu0 %v351_v17  ;;  %v292_v19 = vld [vmem:[%s489_s4] ss:$0 sm:$0xff]  ;;  %s391_s4 = smov [#allocation2]  }
   0xb   :  { %336 = vmatprep.subr.bf16.mxu0 %v389_v1  ;;  %v298_v27 = vld [vmem:[%s491_s6] ss:$0 sm:$0xff]  ;;  %s280_s5 = sshll.u32 %s391_s4, 4  ;;  %vm271_vm4 = vcmp.lt.s32.totalorder %v270_v45, 8  ;;  %s281_s5 = int_to_ptr.vmem [resolvable:$true] %s280_s5 }
   0xc   :  { %325 = vmatpush3.bf16.msra.mxu1 %v348_v6  ;;  %s365_s6 = scalar_lea.vmem %s281_s5, 128  ;;  %p370_p1 = scmp.lt.s32.totalorder %s281_s5, %s281_s5 }
   0xd   :  { %326 = vmatprep.subr.bf16.mxu1 %v389_v1  ;;  %p366_p0 = scmp.ne.s32.totalorder %s281_s5, %s365_s6  ;;  %p371_p2 = scmp.lt.s32.totalorder %s365_s6, %s365_s6 }
   0xe   :  { %337 = vmatpush3.bf16.msra.mxu0 %v352_v18 }
   0xf   :  { %p372_p3 = por %p371_p2, %p370_p1 }
  0x10   :  { %327 = vmatpush3.bf16.msra.mxu1 %v349_v7 }
  0x11   :  { %328 = vmatprep.subr.bf16.mxu1 %v389_v1  ;;  %p373_p4 = pnand %p372_p3, %p366_p0 }
  0x14   :  { %329 = vmatpush3.bf16.msra.mxu1 %v350_v8 }
  0xdc   :  { %v91_v10 = vpop.f32.mrb[0].mxu0 }
  0xdd   :  { %v92_v11 = vadd.f32 %v288_v9, %v91_v10  ;;  %v320_v12 = vpop.f32.mrb[1].mxu0 }
  0xde   :  { %v94_v13 = vpop.f32.mrb[2].mxu0 }
  0xdf   :  { %353 = vtanh.f32 %v92_v11  ;;  %v321_v14 = vpop.f32.mrb[3].mxu0 }
  0xe9   :  { %v354_v15 = vpop.eup %353 }
  0xea   :  { %v98_v16 = vpack.c.bf16 %v354_v15, %v354_v15 }
  0xec   :  { %331 = vmatmul.mubr.msk.bf16.vlgmr.msra.gmra.mrb[0].mxu1 %vm138_vm2, %v98_v16 }
 0x1bf   :  { %v176_v20 = vpop.f32.mrb[0].mxu1 }
 0x1c0   :  { %v177_v21 = vadd.f32 %v292_v19, %v176_v20  ;;  %v332_v22 = vpop.f32.mrb[1].mxu1 }
 0x1c1   :  { %v179_v23 = vpop.f32.mrb[2].mxu1 }
 0x1c2   :  { %355 = vtanh.f32 %v177_v21  ;;  %v333_v24 = vpop.f32.mrb[3].mxu1 }
 0x1cc   :  { %v356_v25 = vpop.eup %355 }
 0x1cd   :  { %v183_v26 = vpack.c.bf16 %v356_v25, %v356_v25 }
 0x1cf   :  { %339 = vmatmul.mubr.msk.bf16.vlgmr.msra.gmra.mrb[4].mxu0 %vm53_vm1, %v183_v26 }
 0x2a2   :  { %v244_v28 = vpop.f32.mrb[4].mxu0 }
 0x2a3   :  { %v245_v29 = vadd.f32 %v298_v27, %v244_v28  ;;  %v340_v30 = vpop.f32.mrb[5].mxu0 }
 0x2a4   :  { %v247_v31 = vpop.f32.mrb[6].mxu0 }
 0x2a5   :  { %v341_v32 = vpop.f32.mrb[7].mxu0  ;;  %v257_v33 = vsel %vm256_vm3, %v245_v29, -inf  ;;  %v302_v39 = vmul.f32 -1.442695, %v245_v29 }
 0x2a6   :  { %258 = vmax.xlane.f32.xlu0 %v257_v33 }
 0x333   :  { %v259_v34 = vpop.xlane.xlu0 %258 }
 0x334   :  { %v260_v35 = vsub.f32 %v245_v29, %v259_v34 }
 0x336   :  { %v261_v36 = vmul.f32 1.442695, %v260_v35 }
 0x338   :  { %357 = vpow2.f32 %v261_v36 }
 0x339   :  { %359 = vpow2.f32 %v302_v39 }
 0x342   :  { %v358_v37 = vpop.eup %357 }
 0x343   :  { %v263_v38 = vsel %vm256_vm3, %v358_v37, 0.0  ;;  %v360_v40 = vpop.eup %359 }
 0x344   :  { %264 = vadd.xlane.f32.xlu0 %v263_v38  ;;  %v253_v42 = vadd.f32 1.0, %v360_v40 }
 0x3d1   :  { %v265_v41 = vpop.xlane.xlu0 %264 }
 0x3d2   :  { %v266_v43 = vmul.f32 0.5, %v265_v41 }
 0x3d4   :  { %361 = vrcp.f32 %v266_v43 }
 0x3d5   :  { %363 = vrcp.f32 %v253_v42 }
 0x3de   :  { %v362_v46 = vpop.eup %361 }
 0x3df   :  { %v268_v47 = vmul.f32 %v362_v46, %v358_v37  ;;  %v364_v48 = vpop.eup %363 }
 0x3e1   :  { %v272_v49 = vsel %vm271_vm4, %v364_v48, %v268_v47 }
 0x3e2   :  { %273 = vst.msk [vmem:[#allocation2] sm:$0xff] %vm256_vm3, %v272_v49 }
 0x3e3   :  { %376 = shalt.err (!%p373_p4)
}
 0x3e4   :  { %s377_s23 = scalar_lea.hbm %s492_s7, 128 }
 0x3e5   :  { %p378_p5 = scmp.ne.s32.totalorder %s492_s7, %s377_s23  ;;  %p381_p6 = scmp.lt.u32.totalorder %s377_s23, %s492_s7 }
 0x3e7   :  { %p383_p7 = pnand %p381_p6, %p378_p5 }
 0x3e9   :  { %386 = shalt.err (!%p383_p7)
}
 0x3ea   :  { %283 = dma.vmem_to_hbm [thread:$0]  %s281_s5, 128, %s492_s7, [#allocation3]  }
 0x3eb   :  { %387 = dma.done.wait [#allocation3], 128  }
 0x3ec   :  { %388 = vsyncadd [#allocation3], 4294967168 }
 0x3ed   :  { %287 = vsyncpa [#allocation3], 1 }

</bundles_post_ra>
